<compile_context>
chip_gen: v7x
topology: tpu7x:2x2x1
jax: 0.10.0
libtpu: 0.0.40
codegen_flags: <defaults>
</compile_context>

<pallas_src>
import functools

import jax
import jax.numpy as jnp
from jax.experimental import pallas as pl
from jax.experimental.pallas import tpu as pltpu

_LANE = 128
_SUBLANE = 8
_NEG = -1e30             # fill for padded vocab lanes (drops out of logsumexp)
_MAX_TILE_N = 1024       # cap on tokens per grid step
_VMEM_LIMIT = 32 * 1024 * 1024


def _round_up(x, m):
    return (x + m - 1) // m * m


# ---------------------------------------------------------------------------
# In-kernel helpers
# ---------------------------------------------------------------------------

def _gather_rows(idx_col, emb_ref):
    """Exact f32 row gather via one-hot matmuls against 3 bf16 table planes."""
    tile_n = idx_col.shape[0]
    r_pad = emb_ref.shape[1]
    row_iota = jax.lax.broadcasted_iota(jnp.int32, (tile_n, r_pad), 1)
    onehot = jnp.where(row_iota == idx_col, 1.0, 0.0).astype(jnp.bfloat16)
    # hi + mid + lo == original f32 table; each product is exact (one-hot is
    # exactly representable in bf16), accumulation is in f32.
    logits = jnp.dot(onehot, emb_ref[0], preferred_element_type=jnp.float32)
    logits = logits + jnp.dot(onehot, emb_ref[1], preferred_element_type=jnp.float32)
    logits = logits + jnp.dot(onehot, emb_ref[2], preferred_element_type=jnp.float32)
    return logits


def _per_token_nll(logits, tgt_col):
    """Cross-entropy NLL per row: logsumexp(logits) - logits[target]."""
    m = jnp.max(logits, axis=-1, keepdims=True)
    lse = m + jnp.log(jnp.sum(jnp.exp(logits - m), axis=-1, keepdims=True))
    lane = jax.lax.broadcasted_iota(jnp.int32, logits.shape, 1)
    tgt_logit = jnp.sum(jnp.where(lane == tgt_col, logits, 0.0),
                        axis=-1, keepdims=True)
    return lse - tgt_logit


# ---------------------------------------------------------------------------
# Kernels (one tile of TILE_N tokens per grid step; grid axis is "parallel")
# ---------------------------------------------------------------------------

def _loss_logits_kernel(idx_ref, tgt_ref, emb_ref, logits_ref, nll_ref):
    logits = _gather_rows(idx_ref[...], emb_ref)       # (TILE_N, Vpad) f32
    logits_ref[...] = logits                           # sublane/lane-dense store
    nll_ref[...] = _per_token_nll(logits, tgt_ref[...])


def _loss_only_kernel(idx_ref, tgt_ref, emb_ref, nll_ref):
    logits = _gather_rows(idx_ref[...], emb_ref)       # never written to HBM
    nll_ref[...] = _per_token_nll(logits, tgt_ref[...])


def _logits_kernel(idx_ref, emb_ref, logits_ref):
    logits_ref[...] = _gather_rows(idx_ref[...], emb_ref)


# ---------------------------------------------------------------------------
# pallas_call wrappers
# ---------------------------------------------------------------------------

def _pad_split_emb(emb):
    """Pad the (R, V) f32 table to (Rpad, Vpad) and split into 3 bf16 planes."""
    r, v = emb.shape
    v_pad = _round_up(max(v, _LANE), _LANE)
    r_pad = _round_up(max(r, _LANE), _LANE)
    t = emb.astype(jnp.float32)
    t = jnp.pad(t, ((0, 0), (0, v_pad - v)), constant_values=_NEG)
    t = jnp.pad(t, ((0, r_pad - r), (0, 0)), constant_values=0.0)
    hi = t.astype(jnp.bfloat16)
    rem = t - hi.astype(jnp.float32)
    mid = rem.astype(jnp.bfloat16)
    lo = (rem - mid.astype(jnp.float32)).astype(jnp.bfloat16)
    return jnp.stack([hi, mid, lo]), v, v_pad, r_pad   # (3, Rpad, Vpad) bf16


def _choose_tile_n(n, v_pad):
    # Keep one f32 logits block under ~2 MiB (Pallas double-buffers it).
    cap = max(_SUBLANE,
              ((2 * 1024 * 1024) // (4 * v_pad)) // _SUBLANE * _SUBLANE)
    return min(_MAX_TILE_N, cap, _round_up(n, _SUBLANE))


def _specs(tile, v_pad, r_pad):
    emb_spec = pl.BlockSpec((3, r_pad, v_pad), lambda i: (0, 0, 0))  # resident
    col_spec = pl.BlockSpec((tile, 1), lambda i: (i, 0))
    logit_spec = pl.BlockSpec((tile, v_pad), lambda i: (i, 0))
    return emb_spec, col_spec, logit_spec


def _compiler_params():
    return pltpu.CompilerParams(dimension_semantics=("parallel",),
                                vmem_limit_bytes=_VMEM_LIMIT)


@functools.partial(jax.jit, static_argnames=("has_targets",))
def _bigram_call(emb, idx_flat, tgt_flat, has_targets):
    emb3, v, v_pad, r_pad = _pad_split_emb(emb)
    n = idx_flat.shape[0]
    tile = _choose_tile_n(n, v_pad)
    num_tiles = -(-n // tile)
    n_pad = num_tiles * tile
    idx2 = jnp.pad(idx_flat.astype(jnp.int32), (0, n_pad - n)).reshape(n_pad, 1)
    emb_spec, col_spec, logit_spec = _specs(tile, v_pad, r_pad)

    if has_targets:
        tgt2 = jnp.pad(tgt_flat.astype(jnp.int32), (0, n_pad - n)).reshape(n_pad, 1)
        logits_p, nll = pl.pallas_call(
            _loss_logits_kernel,
            grid=(num_tiles,),
            in_specs=[col_spec, col_spec, emb_spec],
            out_specs=(logit_spec, col_spec),
            out_shape=(
                jax.ShapeDtypeStruct((n_pad, v_pad), jnp.float32),
                jax.ShapeDtypeStruct((n_pad, 1), jnp.float32),
            ),
            compiler_params=_compiler_params(),
        )(idx2, tgt2, emb3)
        loss = jnp.sum(nll[:n, 0]) / n
        return logits_p[:n, :v], loss
    else:
        logits_p = pl.pallas_call(
            _logits_kernel,
            grid=(num_tiles,),
            in_specs=[col_spec, emb_spec],
            out_specs=logit_spec,
            out_shape=jax.ShapeDtypeStruct((n_pad, v_pad), jnp.float32),
            compiler_params=_compiler_params(),
        )(idx2, emb3)
        return logits_p[:n, :v], None


@jax.jit
def _bigram_loss_only_call(emb, idx_flat, tgt_flat):
    emb3, _, v_pad, r_pad = _pad_split_emb(emb)
    n = idx_flat.shape[0]
    tile = _choose_tile_n(n, v_pad)
    num_tiles = -(-n // tile)
    n_pad = num_tiles * tile
    idx2 = jnp.pad(idx_flat.astype(jnp.int32), (0, n_pad - n)).reshape(n_pad, 1)
    tgt2 = jnp.pad(tgt_flat.astype(jnp.int32), (0, n_pad - n)).reshape(n_pad, 1)
    emb_spec, col_spec, _ = _specs(tile, v_pad, r_pad)
    nll = pl.pallas_call(
        _loss_only_kernel,
        grid=(num_tiles,),
        in_specs=[col_spec, col_spec, emb_spec],
        out_specs=col_spec,
        out_shape=jax.ShapeDtypeStruct((n_pad, 1), jnp.float32),
        compiler_params=_compiler_params(),
    )(idx2, tgt2, emb3)
    return jnp.sum(nll[:n, 0]) / n


# ---------------------------------------------------------------------------
# Public API mirroring BigramLanguageModel.forward
# ---------------------------------------------------------------------------

def bigram_forward(embedding_table, idx, targets=None):
    """Returns (logits (B, T, V), loss-or-None), matching the PyTorch module."""
    B, T = idx.shape
    V = embedding_table.shape[1]
    idx_flat = idx.reshape(-1).astype(jnp.int32)
    if targets is None:
        logits_flat, _ = _bigram_call(embedding_table, idx_flat,
                                      jnp.zeros_like(idx_flat), False)
        loss = None
    else:
        tgt_flat = targets.reshape(-1).astype(jnp.int32)
        logits_flat, loss = _bigram_call(embedding_table, idx_flat, tgt_flat, True)
    return logits_flat.reshape(B, T, V), loss


def bigram_loss(embedding_table, idx, targets):
    """Loss-only path: skips writing the (B*T, Vpad) logits back to HBM."""
    idx_flat = idx.reshape(-1).astype(jnp.int32)
    tgt_flat = targets.reshape(-1).astype(jnp.int32)
    return _bigram_loss_only_call(embedding_table, idx_flat, tgt_flat)


def _reference_forward(embedding_table, idx, targets):
    """Pure-JAX reference matching PyTorch semantics."""
    logits = embedding_table[idx]                      # (B, T, V)
    B, T, V = logits.shape
    lf = logits.reshape(B * T, V)
    tf = targets.reshape(B * T)
    lse = jax.nn.logsumexp(lf, axis=-1)
    nll = lse - lf[jnp.arange(B * T), tf]
    return logits, jnp.mean(nll)


if __name__ == "__main__":
    vocab_size = 65
    B, T = 2, 8

    key = jax.random.PRNGKey(0)
    k_emb, k_idx, k_tgt = jax.random.split(key, 3)
    # nn.Embedding default init: N(0, 1)
    embedding_table = jax.random.normal(k_emb, (vocab_size, vocab_size),
                                        dtype=jnp.float32)
    idx = jax.random.randint(k_idx, (B, T), 0, vocab_size, dtype=jnp.int32)
    targets = jax.random.randint(k_tgt, (B, T), 0, vocab_size, dtype=jnp.int32)

    # Forward with targets (logits + loss).
    logits, loss = bigram_forward(embedding_table, idx, targets)
    logits = jax.block_until_ready(logits)
    loss = jax.block_until_ready(loss)

    # Forward without targets (logits only).
    logits_only, loss_none = bigram_forward(embedding_table, idx, None)
    logits_only = jax.block_until_ready(logits_only)
    assert loss_none is None

    # Loss-only variant (no logits HBM writeback).
    loss_only = jax.block_until_ready(bigram_loss(embedding_table, idx, targets))

    # Check against pure-JAX reference.
    ref_logits, ref_loss = _reference_forward(embedding_table, idx, targets)
    assert logits.shape == (B, T, vocab_size)
    assert jnp.allclose(logits, ref_logits, atol=1e-5, rtol=1e-5)
    assert jnp.allclose(logits_only, ref_logits, atol=1e-5, rtol=1e-5)
    assert jnp.allclose(loss, ref_loss, atol=1e-5, rtol=1e-5)
    assert jnp.allclose(loss_only, ref_loss, atol=1e-5, rtol=1e-5)

    print("KERNEL_OK")
</pallas_src>

<mosaic_0001>
module attributes {stable_mosaic.version = 11 : i64} {
  func.func @_loss_logits_kernel(%arg0: i32, %arg1: memref<16x1xi32, #tpu.memory_space<vmem>>, %arg2: memref<16x1xi32, #tpu.memory_space<vmem>>, %arg3: memref<3x128x128xbf16, #tpu.memory_space<vmem>>, %arg4: memref<16x128xf32, #tpu.memory_space<vmem>>, %arg5: memref<16x1xf32, #tpu.memory_space<vmem>>) attributes {dimension_semantics = [#tpu.dimension_semantics<parallel>], iteration_bounds = array<i64: 1>, scalar_prefetch = 0 : i64, scratch_operands = 0 : i64, tpu.core_type = #tpu.core_type<tc>, window_params = [{transform_indices = @transform_0, window_bounds = array<i64: 16, 1>}, {transform_indices = @transform_1, window_bounds = array<i64: 16, 1>}, {pipeline_mode = #tpu.pipeline_mode<synchronous>, transform_indices = @transform_2, window_bounds = array<i64: 3, 128, 128>}, {transform_indices = @transform_3, window_bounds = array<i64: 16, 128>}, {transform_indices = @transform_4, window_bounds = array<i64: 16, 1>}]} {
    %c0 = arith.constant 0 : index
    %c0_0 = arith.constant 0 : index
    %0 = vector.load %arg1[%c0, %c0_0] : memref<16x1xi32, #tpu.memory_space<vmem>>, vector<16x1xi32>
    %1 = tpu.iota {dimensions = array<i32: 1>} : vector<16x128xi32>
    %2 = vector.broadcast %0 : vector<16x1xi32> to vector<16x128xi32>
    %3 = arith.cmpi eq, %1, %2 : vector<16x128xi32>
    %cst = arith.constant 1.000000e+00 : f32
    %cst_1 = arith.constant 0.000000e+00 : f32
    %4 = vector.broadcast %cst : f32 to vector<16x128xf32>
    %5 = vector.broadcast %cst_1 : f32 to vector<16x128xf32>
    %6 = arith.select %3, %4, %5 : vector<16x128xi1>, vector<16x128xf32>
    %7 = arith.truncf %6 : vector<16x128xf32> to vector<16x128xbf16>
    %c0_2 = arith.constant 0 : index
    %c0_3 = arith.constant 0 : index
    %c0_4 = arith.constant 0 : index
    %8 = vector.load %arg3[%c0_2, %c0_3, %c0_4] : memref<3x128x128xbf16, #tpu.memory_space<vmem>>, vector<1x128x128xbf16>
    %9 = vector.shape_cast %8 : vector<1x128x128xbf16> to vector<128x128xbf16>
    %cst_5 = arith.constant dense<0.000000e+00> : vector<16x128xf32>
    %10 = tpu.matmul %7, %9, %cst_5 {dimension_numbers = #tpu.dot_dimension_numbers<[1], [0], [0], [1], [0, 0, 1, 1], [], []>} : vector<16x128xbf16>, vector<128x128xbf16>, vector<16x128xf32> -> vector<16x128xf32>
    %c1 = arith.constant 1 : index
    %c0_6 = arith.constant 0 : index
    %c0_7 = arith.constant 0 : index
    %11 = vector.load %arg3[%c1, %c0_6, %c0_7] : memref<3x128x128xbf16, #tpu.memory_space<vmem>>, vector<1x128x128xbf16>
    %12 = vector.shape_cast %11 : vector<1x128x128xbf16> to vector<128x128xbf16>
    %cst_8 = arith.constant dense<0.000000e+00> : vector<16x128xf32>
    %13 = tpu.matmul %7, %12, %cst_8 {dimension_numbers = #tpu.dot_dimension_numbers<[1], [0], [0], [1], [0, 0, 1, 1], [], []>} : vector<16x128xbf16>, vector<128x128xbf16>, vector<16x128xf32> -> vector<16x128xf32>
    %14 = arith.addf %10, %13 : vector<16x128xf32>
    %c2 = arith.constant 2 : index
    %c0_9 = arith.constant 0 : index
    %c0_10 = arith.constant 0 : index
    %15 = vector.load %arg3[%c2, %c0_9, %c0_10] : memref<3x128x128xbf16, #tpu.memory_space<vmem>>, vector<1x128x128xbf16>
    %16 = vector.shape_cast %15 : vector<1x128x128xbf16> to vector<128x128xbf16>
    %cst_11 = arith.constant dense<0.000000e+00> : vector<16x128xf32>
    %17 = tpu.matmul %7, %16, %cst_11 {dimension_numbers = #tpu.dot_dimension_numbers<[1], [0], [0], [1], [0, 0, 1, 1], [], []>} : vector<16x128xbf16>, vector<128x128xbf16>, vector<16x128xf32> -> vector<16x128xf32>
    %18 = arith.addf %14, %17 : vector<16x128xf32>
    %c0_12 = arith.constant 0 : index
    %c0_13 = arith.constant 0 : index
    %19 = vector.load %arg4[%c0_12, %c0_13] : memref<16x128xf32, #tpu.memory_space<vmem>>, vector<16x128xf32>
    tpu.vector_store %arg4[%c0_12, %c0_13], %18 {strides = array<i32>} : memref<16x128xf32, #tpu.memory_space<vmem>>, vector<16x128xf32>,
    %c0_14 = arith.constant 0 : index
    %c0_15 = arith.constant 0 : index
    %20 = vector.load %arg2[%c0_14, %c0_15] : memref<16x1xi32, #tpu.memory_space<vmem>>, vector<16x1xi32>
    %cst_16 = arith.constant dense<0xFF800000> : vector<16xf32>
    %21 = vector.multi_reduction <maximumf>, %18, %cst_16 [1] : vector<16x128xf32> to vector<16xf32>
    %22 = vector.shape_cast %21 : vector<16xf32> to vector<16x1xf32>
    %23 = vector.broadcast %22 : vector<16x1xf32> to vector<16x128xf32>
    %24 = arith.subf %18, %23 : vector<16x128xf32>
    %25 = math.exp %24 : vector<16x128xf32>
    %cst_17 = arith.constant dense<0.000000e+00> : vector<16xf32>
    %26 = vector.multi_reduction <add>, %25, %cst_17 [1] : vector<16x128xf32> to vector<16xf32>
    %27 = vector.shape_cast %26 : vector<16xf32> to vector<16x1xf32>
    %28 = math.log %27 : vector<16x1xf32>
    %29 = arith.addf %22, %28 : vector<16x1xf32>
    %30 = tpu.iota {dimensions = array<i32: 1>} : vector<16x128xi32>
    %31 = vector.broadcast %20 : vector<16x1xi32> to vector<16x128xi32>
    %32 = arith.cmpi eq, %30, %31 : vector<16x128xi32>
    %cst_18 = arith.constant 0.000000e+00 : f32
    %33 = vector.broadcast %cst_18 : f32 to vector<16x128xf32>
    %34 = arith.select %32, %18, %33 : vector<16x128xi1>, vector<16x128xf32>
    %cst_19 = arith.constant dense<0.000000e+00> : vector<16xf32>
    %35 = vector.multi_reduction <add>, %34, %cst_19 [1] : vector<16x128xf32> to vector<16xf32>
    %36 = vector.shape_cast %35 : vector<16xf32> to vector<16x1xf32>
    %37 = arith.subf %29, %36 : vector<16x1xf32>
    %c0_20 = arith.constant 0 : index
    %c0_21 = arith.constant 0 : index
    %38 = vector.load %arg5[%c0_20, %c0_21] : memref<16x1xf32, #tpu.memory_space<vmem>>, vector<16x1xf32>
    tpu.vector_store %arg5[%c0_20, %c0_21], %37 {strides = array<i32>} : memref<16x1xf32, #tpu.memory_space<vmem>>, vector<16x1xf32>,
    return
  }
  func.func @transform_0(%arg0: i32) -> (i32, i32) {
    %c0_i32 = arith.constant 0 : i32
    %c0_i32_0 = arith.constant 0 : i32
    return %arg0, %c0_i32 : i32, i32
  }
  func.func @transform_1(%arg0: i32) -> (i32, i32) {
    %c0_i32 = arith.constant 0 : i32
    %c0_i32_0 = arith.constant 0 : i32
    return %arg0, %c0_i32 : i32, i32
  }
  func.func @transform_2(%arg0: i32) -> (i32, i32, i32) {
    %c0_i32 = arith.constant 0 : i32
    %c0_i32_0 = arith.constant 0 : i32
    %c0_i32_1 = arith.constant 0 : i32
    %c0_i32_2 = arith.constant 0 : i32
    return %c0_i32, %c0_i32_0, %c0_i32_1 : i32, i32, i32
  }
  func.func @transform_3(%arg0: i32) -> (i32, i32) {
    %c0_i32 = arith.constant 0 : i32
    %c0_i32_0 = arith.constant 0 : i32
    return %arg0, %c0_i32 : i32, i32
  }
  func.func @transform_4(%arg0: i32) -> (i32, i32) {
    %c0_i32 = arith.constant 0 : i32
    %c0_i32_0 = arith.constant 0 : i32
    return %arg0, %c0_i32 : i32, i32
  }
}

</mosaic_0001>

<bundles_post_ra>
// kernel: _bigram_call.1
= control target key start
LH: loop header
LB: loop body
LE: loop exit
PB: predicated region body
PF: predicated region fallthrough
CT: control target
= control target key end

     0   :  { %v635_v1 = vmov 0   ;;  %v636_v3 = vmov 0.0   ;;  %vm637_vm0 = vmmov 0   ;;  %s815_s0 = inlined_call_operand.vmem [shape: s32[16,1], index: 0, kind: input, shape index: {}]   ;;  %s816_s1 = inlined_call_operand.vmem [shape: s32[16,1], index: 1, kind: input, shape index: {}]   ;;  %s817_s2 = inlined_call_operand.vmem [shape: bf16[3,128,128], index: 2, kind: input, shape index: {}]   ;;  %s818_s3 = inlined_call_operand.hbm [shape: f32[16,128], index: 3, kind: output, shape index: {0}]   ;;  %s819_s4 = inlined_call_operand.vmem [shape: f32[16,1], index: 4, kind: output, shape index: {1}]  }
   0x1   :  { %v18_v0 = vld [vmem:[%s815_s0] sm:$0xff]  ;;  %577 = vset.pattern.permute.xlu0 %v635_v1  ;;  %v19_v2 = vld [vmem:[%s815_s0 + $0x8] sm:$0xff]  ;;  %524 = vmatprep.subr.bf16.mxu0 %v636_v3  ;;  %v583_v9 = vld [vmem:[%s817_s2 + $0x10] sm:$0xff]  }
   0x2   :  { %v579_v4 = vld [vmem:[%s817_s2] sm:$0xff]   ;;  %23 = vperm.xlu0 %577, %v18_v0   ;;  %504 = vmatprep.subr.bf16.mxu1 %v636_v3  ;;  %v581_v6 = vld [vmem:[%s817_s2 + $0x8] sm:$0xff]   ;;  %v584_v10 = vld [vmem:[%s817_s2 + $0x50] sm:$0xff]  }
   0x3   :  { %v580_v5 = vld [vmem:[%s817_s2 + $0x40] sm:$0xff]   ;;  %525 = vmatpush3.bf16.msra.mxu0 %v579_v4  ;;  %578 = vset.pattern.permute.xlu1 %v635_v1  ;;  %v582_v7 = vld [vmem:[%s817_s2 + $0x48] sm:$0xff]   ;;  %v585_v11 = vld [vmem:[%s817_s2 + $0x18] sm:$0xff]  }
   0x4   :  { %505 = vmatpush3.bf16.msra.mxu1 %v580_v5  ;;  %526 = vmatprep.subr.bf16.mxu0 %v636_v3  ;;  %v354_v8 = vld [vmem:[%s816_s1] sm:$0xff]  ;;  %v586_v12 = vld [vmem:[%s817_s2 + $0x58] sm:$0xff]   ;;  %v589_v15 = vld [vmem:[%s817_s2 + $0x28] sm:$0xff]  }
   0x5   :  { %506 = vmatprep.subr.bf16.mxu1 %v636_v3  ;;  %520 = vmatprep.mubr.msk.bf16.mxu1 %vm637_vm0, %v636_v3  ;;  %v587_v13 = vld [vmem:[%s817_s2 + $0x20] sm:$0xff]   ;;  %v590_v16 = vld [vmem:[%s817_s2 + $0x68] sm:$0xff]   ;;  %v591_v17 = vld [vmem:[%s817_s2 + $0x30] sm:$0xff]  }
   0x6   :  { %26 = vperm.xlu0 %577, %v19_v2   ;;  %540 = vmatprep.mubr.msk.bf16.mxu0 %vm637_vm0, %v636_v3  ;;  %v588_v14 = vld [vmem:[%s817_s2 + $0x60] sm:$0xff]   ;;  %v592_v18 = vld [vmem:[%s817_s2 + $0x70] sm:$0xff]  }
   0x7   :  { %527 = vmatpush3.bf16.msra.mxu0 %v581_v6 }
   0x8   :  { %507 = vmatpush3.bf16.msra.mxu1 %v582_v7  ;;  %528 = vmatprep.subr.bf16.mxu0 %v636_v3 }
   0x9   :  { %508 = vmatprep.subr.bf16.mxu1 %v636_v3 }
   0xa   :  { %377 = vperm.xlu0 %577, %v354_v8  }
   0xb   :  { %529 = vmatpush3.bf16.msra.mxu0 %v583_v9 }
   0xc   :  { %509 = vmatpush3.bf16.msra.mxu1 %v584_v10  ;;  %530 = vmatprep.subr.bf16.mxu0 %v636_v3 }
   0xd   :  { %510 = vmatprep.subr.bf16.mxu1 %v636_v3 }
   0xf   :  { %531 = vmatpush3.bf16.msra.mxu0 %v585_v11 }
  0x10   :  { %511 = vmatpush3.bf16.msra.mxu1 %v586_v12  ;;  %532 = vmatprep.subr.bf16.mxu0 %v636_v3 }
  0x11   :  { %512 = vmatprep.subr.bf16.mxu1 %v636_v3 }
  0x13   :  { %533 = vmatpush3.bf16.msra.mxu0 %v587_v13 }
  0x14   :  { %513 = vmatpush3.bf16.msra.mxu1 %v588_v14  ;;  %534 = vmatprep.subr.bf16.mxu0 %v636_v3 }
  0x15   :  { %514 = vmatprep.subr.bf16.mxu1 %v636_v3 }
  0x17   :  { %535 = vmatpush3.bf16.msra.mxu0 %v589_v15 }
  0x18   :  { %515 = vmatpush3.bf16.msra.mxu1 %v590_v16  ;;  %536 = vmatprep.subr.bf16.mxu0 %v636_v3 }
  0x19   :  { %10 = vsyncpa [#allocation3], 0  ;;  %516 = vmatprep.subr.bf16.mxu1 %v636_v3  ;;  %v593_v19 = vld [vmem:[%s817_s2 + $0x38] sm:$0xff]   ;;  %v20_v21 = vlaneseq  ;;  %v595_v25 = vld [vmem:[%s817_s2 + $0x80] sm:$0xff]   ;;  %v638_v27 = vmov 1.0|1.0  }
  0x1a   :  { %v594_v20 = vld [vmem:[%s817_s2 + $0x78] sm:$0xff]   ;;  %v596_v28 = vld [vmem:[%s817_s2 + $0x88] sm:$0xff]   ;;  %v597_v29 = vld [vmem:[%s817_s2 + $0x90] sm:$0xff]  }
  0x1b   :  { %537 = vmatpush3.bf16.msra.mxu0 %v591_v17  ;;  %v745_v23 = vand.u32 127, %v20_v21  ;;  %v598_v30 = vld [vmem:[%s817_s2 + $0x98] sm:$0xff]   ;;  %v599_v31 = vld [vmem:[%s817_s2 + $0xa0] sm:$0xff]   ;;  %v600_v32 = vld [vmem:[%s817_s2 + $0xa8] sm:$0xff]  }
  0x1c   :  { %517 = vmatpush3.bf16.msra.mxu1 %v592_v18  ;;  %538 = vmatprep.subr.bf16.mxu0 %v636_v3  ;;  %v601_v33 = vld [vmem:[%s817_s2 + $0xb0] sm:$0xff]   ;;  %v602_v34 = vld [vmem:[%s817_s2 + $0xb8] sm:$0xff]   ;;  %v355_v45 = vld [vmem:[%s816_s1 + $0x8] sm:$0xff]  ;;  %s639_s1 = smov [#allocation2]  }
  0x1d   :  { %518 = vmatprep.subr.bf16.mxu1 %v636_v3  ;;  %s400_s16 = sshll.u32 %s639_s1, 4  ;;  %s401_s16 = int_to_ptr.vmem [resolvable:$true] %s400_s16 }
  0x1e   :  { %s611_s17 = scalar_lea.vmem %s401_s16, 256  ;;  %p616_p1 = scmp.lt.s32.totalorder %s401_s16, %s401_s16 }
  0x1f   :  { %539 = vmatpush3.bf16.msra.mxu0 %v593_v19  ;;  %p612_p0 = scmp.ne.s32.totalorder %s401_s16, %s611_s17  ;;  %p617_p2 = scmp.lt.s32.totalorder %s611_s17, %s611_s17 }
  0x20   :  { %519 = vmatpush3.bf16.msra.mxu1 %v594_v20  ;;  %544 = vmatprep.subr.bf16.mxu0 %v636_v3 }
  0x21   :  { %p618_p3 = por %p617_p2, %p616_p1 }
  0x23   :  { %p619_p4 = pnand %p618_p3, %p612_p0 }
  0x81   :  { %v24_v22 = vpop.permute.xlu0 %23 }
  0x82   :  { %vm28_vm1 = vcmp.eq.s32.totalorder %v745_v23, %v24_v22 }
  0x85   :  { %v27_v24 = vpop.permute.xlu0 %26 }
  0x86   :  { %vm29_vm2 = vcmp.eq.s32.totalorder %v745_v23, %v27_v24 }
  0x87   :  { %vm752_vm3 = vmpackc.low %vm29_vm2, %vm28_vm1 }
  0x88   :  { %521 = vmatmul.mubr.msk.bf16.vlgmr.msra.gmra.mrb[0].mxu1 %vm752_vm3, %v638_v27  ;;  %541 = vmatmul.mubr.msk.bf16.vlgmr.msra.gmra.mrb[0].mxu0 %vm752_vm3, %v638_v27 }
  0x89   :  { %545 = vmatpush3.bf16.msra.mxu0 %v595_v25  ;;  %560 = vmatprep.mubr.msk.bf16.mxu0 %vm637_vm0, %v636_v3  ;;  %v378_v53 = vpop.permute.xlu0 %377 }
  0x8a   :  { %546 = vmatprep.subr.bf16.mxu0 %v636_v3  ;;  %vm382_vm4 = vcmp.eq.s32.totalorder %v745_v23, %v378_v53 }
  0x8d   :  { %547 = vmatpush3.bf16.msra.mxu0 %v596_v28 }
  0x8e   :  { %548 = vmatprep.subr.bf16.mxu0 %v636_v3 }
  0x91   :  { %549 = vmatpush3.bf16.msra.mxu0 %v597_v29 }
  0x92   :  { %550 = vmatprep.subr.bf16.mxu0 %v636_v3 }
  0x95   :  { %551 = vmatpush3.bf16.msra.mxu0 %v598_v30 }
  0x96   :  { %552 = vmatprep.subr.bf16.mxu0 %v636_v3 }
  0x99   :  { %553 = vmatpush3.bf16.msra.mxu0 %v599_v31 }
  0x9a   :  { %554 = vmatprep.subr.bf16.mxu0 %v636_v3 }
  0x9d   :  { %555 = vmatpush3.bf16.msra.mxu0 %v600_v32 }
  0x9e   :  { %556 = vmatprep.subr.bf16.mxu0 %v636_v3 }
  0xa1   :  { %557 = vmatpush3.bf16.msra.mxu0 %v601_v33 }
  0xa2   :  { %558 = vmatprep.subr.bf16.mxu0 %v636_v3 }
  0xa5   :  { %559 = vmatpush3.bf16.msra.mxu0 %v602_v34 }
  0xa8   :  { %561 = vmatmul.mubr.msk.bf16.vlgmr.msra.gmra.mrb[0].mxu0 %vm752_vm3, %v638_v27 }
 0x15b   :  { %v148_v35 = vpop.f32.mrb[0].mxu1 }
 0x15c   :  { %v522_v36 = vpop.f32.mrb[1].mxu1 }
 0x15d   :  { %v151_v37 = vpop.f32.mrb[2].mxu1 }
 0x15e   :  { %v523_v38 = vpop.f32.mrb[3].mxu1 }
 0x17b   :  { %v343_v39 = vpop.f32.mrb[0].mxu0 }
 0x17c   :  { %v564_v40 = vadd.f32 %v343_v39, %v148_v35  ;;  %v562_v41 = vpop.f32.mrb[1].mxu0 }
 0x17d   :  { %v346_v42 = vpop.f32.mrb[2].mxu0 }
 0x17e   :  { %352 = vst [vmem:[#allocation2] sm:$0xff] %v564_v40  ;;  %v565_v43 = vadd.f32 %v346_v42, %v151_v37  ;;  %v563_v44 = vpop.f32.mrb[3].mxu0  ;;  %356 = vmax.xlane.f32.xlu1 %v564_v40  ;;  %v384_v56 = vsel %vm382_vm4, %v564_v40, 0.0 }
 0x180   :  { %353 = vst [vmem:[#allocation2 + $0x8] sm:$0xff] %v565_v43 }
 0x182   :  { %358 = vmax.xlane.f32.xlu1 %v565_v43 }
 0x193   :  { %380 = vperm.xlu1 %578, %v355_v45  }
 0x20b   :  { %v357_v46 = vpop.xlane.xlu1 %356 }
 0x20c   :  { %v360_v47 = vsub.f32 %v564_v40, %v357_v46 }
 0x20e   :  { %v362_v48 = vmul.f32 1.442695, %v360_v47 }
 0x20f   :  { %v359_v49 = vpop.xlane.xlu1 %358 }
 0x210   :  { %603 = vpow2.f32 %v362_v48  ;;  %v361_v50 = vsub.f32 %v565_v43, %v359_v49 }
 0x212   :  { %v364_v51 = vmul.f32 1.442695, %v361_v50 }
 0x213   :  { %v381_v54 = vpop.permute.xlu1 %380 }
 0x214   :  { %605 = vpow2.f32 %v364_v51  ;;  %vm383_vm5 = vcmp.eq.s32.totalorder %v745_v23, %v381_v54 }
 0x215   :  { %v385_v57 = vsel %vm383_vm5, %v565_v43, 0.0 }
 0x21a   :  { %v604_v52 = vpop.eup %603 }
 0x21b   :  { %366 = vadd.xlane.f32.xlu0 %v604_v52 }
 0x21e   :  { %v606_v55 = vpop.eup %605 }
 0x21f   :  { %368 = vadd.xlane.f32.xlu1 %v606_v55  ;;  %386 = vadd.xlane.f32.xlu0 %v384_v56 }
 0x223   :  { %388 = vadd.xlane.f32.xlu0 %v385_v57 }
 0x224   :  { %622 = shalt.err (!%p619_p4)
}
 0x225   :  { %s623_s20 = scalar_lea.hbm %s818_s3, 256 }
 0x226   :  { %p624_p5 = scmp.ne.s32.totalorder %s818_s3, %s623_s20  ;;  %p627_p6 = scmp.lt.u32.totalorder %s623_s20, %s818_s3 }
 0x228   :  { %p629_p7 = pnand %p627_p6, %p624_p5 }
 0x22a   :  { %632 = shalt.err (!%p629_p7)
}
 0x22b   :  { %s640_s0 = smov 128   ;;  %s641_s25 = smov 8   ;;  %vm392_vm6 = vcmask 7168  }
 0x22c   :  { %406 = dma.vmem_to_hbm [thread:$0]  %s401_s16, 256, %s818_s3, [#allocation3], %s640_s0, %s640_s0, %s641_s25  }
 0x2a8   :  { %v367_v58 = vpop.xlane.xlu0 %366 }
 0x2a9   :  { %607 = vlog2.f32 %v367_v58 }
 0x2ac   :  { %v369_v59 = vpop.xlane.xlu1 %368  ;;  %v387_v62 = vpop.xlane.xlu0 %386 }
 0x2ad   :  { %609 = vlog2.f32 %v369_v59 }
 0x2b0   :  { %v389_v4 = vpop.xlane.xlu0 %388 }
 0x2b3   :  { %v608_v60 = vpop.eup %607 }
 0x2b4   :  { %v371_v61 = vmul.f32 0.6931472, %v608_v60 }
 0x2b6   :  { %v374_v63 = vadd.f32 %v371_v61, %v357_v46 }
 0x2b7   :  { %v610_v0 = vpop.eup %609 }
 0x2b8   :  { %v373_v1 = vmul.f32 0.6931472, %v610_v0  ;;  %v390_v2 = vsub.f32 %v374_v63, %v387_v62 }
 0x2ba   :  { %393 = vst.msk [vmem:[%s819_s4] sm:$0xff] %vm392_vm6, %v390_v2  ;;  %v375_v3 = vadd.f32 %v373_v1, %v359_v49 }
 0x2bc   :  { %v391_v5 = vsub.f32 %v375_v3, %v389_v4 }
 0x2be   :  { %394 = vst.msk [vmem:[%s819_s4 + $0x8] sm:$0xff] %vm392_vm6, %v391_v5 }
 0x2bf   :  { %633 = dma.done.wait [#allocation3], 256  }
 0x2c0   :  { %634 = vsyncadd [#allocation3], 4294967040 }
 0x2c1   :  { %414 = vsyncpa [#allocation3], 1 }

</bundles_post_ra>
